<compile_context>
chip_gen: v6e
topology: v6e:2x2x1
jax: 0.10.0
libtpu: 0.0.40
codegen_flags: <defaults>
</compile_context>

<pallas_src>
import functools

import jax
import jax.numpy as jnp
from jax.experimental import pallas as pl
from jax.experimental.pallas import tpu as pltpu

LANES = 128                       # lane width (last dim of the slab)
F32_SUBLANES = 8                  # fold height for the f32 partial-sum tile
CHUNK_R = 256                     # rows per inner reduce chunk (32 f32 vregs)
BLOCK_BYTES = 4 * 1024 * 1024     # HBM bytes per grid-step block (~4 MiB)
NCORES = 2                        # leading "parallel" axis (v7x: one per TC)


def _sublane_multiple(dtype):
    # Packed sublane tile height: f32 -> 8, bf16/f16 -> 16, int8/fp8 -> 32.
    return 32 // jnp.dtype(dtype).itemsize


def _round_up(x, m):
    return ((x + m - 1) // m) * m


def _abs_sum_kernel(x_ref, o_ref, *, rows, tile_r, nblk_inner, aligned):
    """Accumulate per-core sum(|x|) into a resident (1, 8, 128) output tile."""
    c = pl.program_id(0)          # core split (parallel axis)
    i = pl.program_id(1)          # reduction step within this core

    @pl.when(i == 0)
    def _():
        o_ref[...] = jnp.zeros_like(o_ref)

    g = c * nblk_inner + i        # global (unclamped) block index
    n_full = tile_r // CHUNK_R    # static
    rem_r = tile_r % CHUNK_R      # static, multiple of 8

    def chunk_sum(c0, cr, masked):
        x = jnp.abs(x_ref[pl.ds(c0, cr), :].astype(jnp.float32))
        if masked:
            grow = (g * tile_r + c0
                    + jax.lax.broadcasted_iota(jnp.int32, (cr, LANES), 0))
            x = jnp.where(grow < rows, x, 0.0)
        # Vreg-shaped fold: (cr,128) -> (8,128) with pure elementwise adds.
        return jnp.sum(x.reshape(cr // F32_SUBLANES, F32_SUBLANES, LANES), axis=0)

    def accum(masked):
        part = jnp.zeros((F32_SUBLANES, LANES), jnp.float32)
        if n_full:
            def body(k, carry):
                c0 = pl.multiple_of(k * CHUNK_R, CHUNK_R)
                return carry + chunk_sum(c0, CHUNK_R, masked)
            part = jax.lax.fori_loop(0, n_full, body, part)
        if rem_r:
            part = part + chunk_sum(n_full * CHUNK_R, rem_r, masked)
        o_ref[...] += part[None]

    if aligned:
        # Fully aligned grid: no masking anywhere (static fast path).
        accum(False)
    else:
        needs_mask = (g + 1) * tile_r > rows

        @pl.when(jnp.logical_not(needs_mask))
        def _():
            accum(False)

        @pl.when(needs_mask)
        def _():
            accum(True)


def bc_loss(preds_bc, weight=1.0):
    """weight * mean(|preds_bc|) computed by a Pallas TPU reduction kernel."""
    n_elems = preds_bc.size
    x_dtype = preds_bc.dtype
    itemsize = jnp.dtype(x_dtype).itemsize
    flat = preds_bc.reshape(-1)           # contiguous -> free reshape

    main = (n_elems // LANES) * LANES
    rem = n_elems - main

    total_abs = jnp.float32(0.0)
    if rem:
        # <128-element remainder: tiny wrapper-side sum instead of padding
        # (jnp.pad would copy the whole array in HBM).
        # TODO(synk): the prefix slice below may still materialise `main`
        # elements for ragged sizes; a fully copy-free path needs a manual-DMA
        # kernel over the raw 1-D HBM ref.
        tail = jax.lax.slice(flat, (main,), (n_elems,))
        total_abs = total_abs + jnp.sum(jnp.abs(tail.astype(jnp.float32)))
        flat = jax.lax.slice(flat, (0,), (main,))

    if main:
        x2d = flat.reshape(-1, LANES)     # (rows, 128) lane-dense slab
        rows = x2d.shape[0]

        sub = _sublane_multiple(x_dtype)
        tile_r_max = max(BLOCK_BYTES // (LANES * itemsize), CHUNK_R)
        tile_r_max = _round_up(tile_r_max, CHUNK_R)
        if rows >= tile_r_max:
            tile_r = tile_r_max
        else:
            tile_r = _round_up(rows, sub)

        total_blocks = pl.cdiv(rows, tile_r)
        nblk_inner = pl.cdiv(total_blocks, NCORES)
        aligned = (rows % tile_r == 0) and (total_blocks % NCORES == 0)

        def x_index_map(c, i):
            # Clamp so padded/duplicate blocks of the last core never DMA out
            # of bounds; their contribution is zeroed by the in-kernel mask.
            g = jnp.minimum(c * nblk_inner + i, total_blocks - 1)
            return (g, 0)

        partials = pl.pallas_call(
            functools.partial(_abs_sum_kernel, rows=rows, tile_r=tile_r,
                              nblk_inner=nblk_inner, aligned=aligned),
            out_shape=jax.ShapeDtypeStruct(
                (NCORES, F32_SUBLANES, LANES), jnp.float32),
            grid_spec=pltpu.PrefetchScalarGridSpec(
                num_scalar_prefetch=0,
                grid=(NCORES, nblk_inner),
                in_specs=[pl.BlockSpec((tile_r, LANES), x_index_map)],
                out_specs=pl.BlockSpec((1, F32_SUBLANES, LANES),
                                       lambda c, i: (c, 0, 0)),
            ),
            compiler_params=pltpu.CompilerParams(
                dimension_semantics=("parallel", "arbitrary"),
                vmem_limit_bytes=32 * 1024 * 1024,
            ),
            cost_estimate=pl.CostEstimate(
                flops=2 * main,
                transcendentals=0,
                bytes_accessed=main * itemsize),
        )(x2d)
        # Single tiny cross-lane reduce of the (2, 8, 128) partials + scale.
        # f32 accumulation drift is mitigated by the per-chunk / per-core
        # partial-sum tree; fine for a mean loss.
        total_abs = total_abs + jnp.sum(partials)

    return (jnp.float32(weight) / jnp.float32(n_elems)) * total_abs


if __name__ == "__main__":
    key = jax.random.PRNGKey(0)
    k0, k1, k2, k3 = jax.random.split(key, 4)

    # (B, C, H, W) feature-map input, as the module's forward expects.
    x = jax.random.normal(k0, (2, 4, 16, 16), dtype=jnp.float32)
    loss = jax.block_until_ready(bc_loss(x, weight=1.0))
    ref = 1.0 * jnp.mean(jnp.abs(x))
    assert jnp.allclose(loss, ref, rtol=1e-5, atol=1e-6), (loss, ref)

    # Ragged element count (not a multiple of 128): in-kernel tail mask +
    # tiny wrapper-side remainder sum (no full-array pad).
    y = jax.random.normal(k1, (2, 3, 7, 5), dtype=jnp.float32)
    loss2 = jax.block_until_ready(bc_loss(y, weight=0.5))
    ref2 = 0.5 * jnp.mean(jnp.abs(y))
    assert jnp.allclose(loss2, ref2, rtol=1e-5, atol=1e-6), (loss2, ref2)

    # Narrow dtype: exercises the packed-sublane (16-row) tiling for bf16.
    z = jax.random.normal(k2, (2, 4, 16, 16), dtype=jnp.bfloat16)
    loss3 = jax.block_until_ready(bc_loss(z, weight=2.0))
    ref3 = 2.0 * jnp.mean(jnp.abs(z.astype(jnp.float32)))
    assert jnp.allclose(loss3, ref3, rtol=1e-5, atol=1e-5), (loss3, ref3)

    # Larger input: exercises multi-block grid, the chunked fori_loop reduce,
    # and the two-way core split with an odd block count (clamped duplicate
    # block fully masked).
    w = jax.random.normal(k3, (3, 8, 512, 256), dtype=jnp.float32)
    loss4 = jax.block_until_ready(bc_loss(w, weight=0.25))
    ref4 = 0.25 * jnp.mean(jnp.abs(w))
    assert jnp.allclose(loss4, ref4, rtol=1e-5, atol=1e-6), (loss4, ref4)

    print("KERNEL_OK")
</pallas_src>

<mosaic_0001>
module attributes {stable_mosaic.version = 11 : i64} {
  func.func @_abs_sum_kernel(%arg0: i32, %arg1: i32, %arg2: memref<16x128xf32, #tpu.memory_space<vmem>>, %arg3: memref<1x8x128xf32, #tpu.memory_space<vmem>>) attributes {dimension_semantics = [#tpu.dimension_semantics<parallel>, #tpu.dimension_semantics<arbitrary>], iteration_bounds = array<i64: 2, 1>, scalar_prefetch = 0 : i64, scratch_operands = 0 : i64, tpu.core_type = #tpu.core_type<tc>, window_params = [{transform_indices = @transform_0, window_bounds = array<i64: 16, 128>}, {transform_indices = @transform_1, window_bounds = array<i64: 1, 8, 128>}]} {
    %c0_i32 = arith.constant 0 : i32
    %0 = arith.cmpi eq, %arg1, %c0_i32 : i32
    %1 = arith.extui %0 : i1 to i32
    %c0_i32_0 = arith.constant 0 : i32
    %2 = arith.cmpi ne, %1, %c0_i32_0 : i32
    scf.if %2 {
      %cst = arith.constant 0.000000e+00 : f32
      %13 = vector.broadcast %cst : f32 to vector<1x8x128xf32>
      %c0 = arith.constant 0 : index
      %c0_5 = arith.constant 0 : index
      %c0_6 = arith.constant 0 : index
      %14 = vector.load %arg3[%c0, %c0_5, %c0_6] : memref<1x8x128xf32, #tpu.memory_space<vmem>>, vector<1x8x128xf32>
      tpu.vector_store %arg3[%c0, %c0_5, %c0_6], %13 {strides = array<i32>} : memref<1x8x128xf32, #tpu.memory_space<vmem>>, vector<1x8x128xf32>,
    } else {
    }
    %c1_i32 = arith.constant 1 : i32
    %3 = arith.muli %arg0, %c1_i32 : i32
    %4 = arith.addi %3, %arg1 : i32
    %c1_i32_1 = arith.constant 1 : i32
    %5 = arith.addi %4, %c1_i32_1 : i32
    %c16_i32 = arith.constant 16 : i32
    %6 = arith.muli %5, %c16_i32 : i32
    %c16_i32_2 = arith.constant 16 : i32
    %7 = arith.cmpi sgt, %6, %c16_i32_2 : i32
    %true = arith.constant true
    %8 = arith.xori %7, %true : i1
    %9 = arith.extui %8 : i1 to i32
    %c0_i32_3 = arith.constant 0 : i32
    %10 = arith.cmpi ne, %9, %c0_i32_3 : i32
    scf.if %10 {
      %cst = arith.constant 0.000000e+00 : f32
      %13 = vector.broadcast %cst : f32 to vector<8x128xf32>
      %c0 = arith.constant 0 : index
      %c0_5 = arith.constant 0 : index
      %14 = vector.load %arg2[%c0, %c0_5] : memref<16x128xf32, #tpu.memory_space<vmem>>, vector<16x128xf32>
      %15 = math.absf %14 : vector<16x128xf32>
      %16 = vector.shape_cast %15 : vector<16x128xf32> to vector<2x8x128xf32>
      %cst_6 = arith.constant dense<0.000000e+00> : vector<8x128xf32>
      %17 = vector.multi_reduction <add>, %16, %cst_6 [0] : vector<2x8x128xf32> to vector<8x128xf32>
      %18 = arith.addf %13, %17 : vector<8x128xf32>
      %c0_7 = arith.constant 0 : index
      %c0_8 = arith.constant 0 : index
      %c0_9 = arith.constant 0 : index
      %19 = vector.load %arg3[%c0_7, %c0_8, %c0_9] : memref<1x8x128xf32, #tpu.memory_space<vmem>>, vector<1x8x128xf32>
      %20 = vector.shape_cast %18 : vector<8x128xf32> to vector<1x8x128xf32>
      %21 = arith.addf %19, %20 : vector<1x8x128xf32>
      %c0_10 = arith.constant 0 : index
      %c0_11 = arith.constant 0 : index
      %c0_12 = arith.constant 0 : index
      %22 = vector.load %arg3[%c0_10, %c0_11, %c0_12] : memref<1x8x128xf32, #tpu.memory_space<vmem>>, vector<1x8x128xf32>
      tpu.vector_store %arg3[%c0_10, %c0_11, %c0_12], %21 {strides = array<i32>} : memref<1x8x128xf32, #tpu.memory_space<vmem>>, vector<1x8x128xf32>,
    } else {
    }
    %11 = arith.extui %7 : i1 to i32
    %c0_i32_4 = arith.constant 0 : i32
    %12 = arith.cmpi ne, %11, %c0_i32_4 : i32
    scf.if %12 {
      %cst = arith.constant 0.000000e+00 : f32
      %13 = vector.broadcast %cst : f32 to vector<8x128xf32>
      %c0 = arith.constant 0 : index
      %c0_5 = arith.constant 0 : index
      %14 = vector.load %arg2[%c0, %c0_5] : memref<16x128xf32, #tpu.memory_space<vmem>>, vector<16x128xf32>
      %15 = math.absf %14 : vector<16x128xf32>
      %c16_i32_6 = arith.constant 16 : i32
      %16 = arith.muli %4, %c16_i32_6 : i32
      %c0_i32_7 = arith.constant 0 : i32
      %17 = arith.addi %16, %c0_i32_7 : i32
      %18 = tpu.iota {dimensions = array<i32: 0>} : vector<16x128xi32>
      %19 = vector.broadcast %17 : i32 to vector<16x128xi32>
      %20 = arith.addi %19, %18 : vector<16x128xi32>
      %c16_i32_8 = arith.constant 16 : i32
      %21 = vector.broadcast %c16_i32_8 : i32 to vector<16x128xi32>
      %22 = arith.cmpi slt, %20, %21 : vector<16x128xi32>
      %cst_9 = arith.constant 0.000000e+00 : f32
      %23 = vector.broadcast %cst_9 : f32 to vector<16x128xf32>
      %24 = arith.select %22, %15, %23 : vector<16x128xi1>, vector<16x128xf32>
      %25 = vector.shape_cast %24 : vector<16x128xf32> to vector<2x8x128xf32>
      %cst_10 = arith.constant dense<0.000000e+00> : vector<8x128xf32>
      %26 = vector.multi_reduction <add>, %25, %cst_10 [0] : vector<2x8x128xf32> to vector<8x128xf32>
      %27 = arith.addf %13, %26 : vector<8x128xf32>
      %c0_11 = arith.constant 0 : index
      %c0_12 = arith.constant 0 : index
      %c0_13 = arith.constant 0 : index
      %28 = vector.load %arg3[%c0_11, %c0_12, %c0_13] : memref<1x8x128xf32, #tpu.memory_space<vmem>>, vector<1x8x128xf32>
      %29 = vector.shape_cast %27 : vector<8x128xf32> to vector<1x8x128xf32>
      %30 = arith.addf %28, %29 : vector<1x8x128xf32>
      %c0_14 = arith.constant 0 : index
      %c0_15 = arith.constant 0 : index
      %c0_16 = arith.constant 0 : index
      %31 = vector.load %arg3[%c0_14, %c0_15, %c0_16] : memref<1x8x128xf32, #tpu.memory_space<vmem>>, vector<1x8x128xf32>
      tpu.vector_store %arg3[%c0_14, %c0_15, %c0_16], %30 {strides = array<i32>} : memref<1x8x128xf32, #tpu.memory_space<vmem>>, vector<1x8x128xf32>,
    } else {
    }
    return
  }
  func.func @transform_0(%arg0: i32, %arg1: i32) -> (i32, i32) {
    %c1_i32 = arith.constant 1 : i32
    %0 = arith.muli %arg0, %c1_i32 : i32
    %1 = arith.addi %0, %arg1 : i32
    %c0_i32 = arith.constant 0 : i32
    %2 = arith.minsi %1, %c0_i32 : i32
    %c0_i32_0 = arith.constant 0 : i32
    %c0_i32_1 = arith.constant 0 : i32
    return %2, %c0_i32_0 : i32, i32
  }
  func.func @transform_1(%arg0: i32, %arg1: i32) -> (i32, i32, i32) {
    %c0_i32 = arith.constant 0 : i32
    %c0_i32_0 = arith.constant 0 : i32
    %c0_i32_1 = arith.constant 0 : i32
    return %arg0, %c0_i32, %c0_i32_0 : i32, i32, i32
  }
}

</mosaic_0001>

<bundles_post_ra>
// kernel: tpu_custom_call.1
= control target key start
LH: loop header
LB: loop body
LE: loop exit
PB: predicated region body
PF: predicated region fallthrough
CT: control target
= control target key end

     0   :  { %6 = vsyncpa [#allocation3], 0  ;;  %s711_s0 = inlined_call_operand.hbm [shape: f32[16,128], index: 0, kind: input, shape index: {}]   ;;  %s712_s1 = inlined_call_operand.hbm [shape: f32[2,8,128], index: 1, kind: output, shape index: {}]  }
   0x1   :  { %8 = vsyncpa [#allocation3 + $0x1], 0 }
   0x2   :  { %9 = vsyncpa [#allocation4], 0 }
   0x3   :  { %11 = vsyncpa [#allocation4 + $0x1], 0  ;;  %s553_s6 = smov 0   ;;  %s555_s7 = smov 0  }
   0x4   :  { %s557_s8 = smov 0   ;;  %s559_s9 = smov 0  }
   0x5   :  { %s561_s10 = smov 0   ;;  %s563_s11 = smov 0  }
   0x6   :  { %s565_s12 = smov 0   ;;  %s567_s13 = smov 0  }
   0x7 LB: > { %s297_s14 = sadd.s32 4294967295, %s536_s13   ;;  %s298_s15 = sadd.s32 4294967294, %s536_s13   ;;  %s536_s13 = sphi %s567_s13, %s17_s13   ;;  %s532_s12 = sphi %s565_s12, %s729_s12   ;;  %s528_s11 = sphi %s563_s11, %s728_s11   ;;  %s524_s10 = sphi %s561_s10, %s701_s10   ;;  %s520_s9 = sphi %s559_s9, %s727_s9   ;;  %s516_s8 = sphi %s557_s8, %s726_s8   ;;  %s512_s7 = sphi %s555_s7, %s725_s7   ;;  %s508_s6 = sphi %s553_s6, %s724_s6  }
   0x8   : > { %s29_s16 = sadd.s32 1, %s532_s12  ;;  %p505_p1 = scmp.ne.s32.totalorder %s524_s10, 0 }
   0x9   : > { %p31_p0 = scmp.ge.s32.totalorder %s29_s16, 2  ;;  %p50_p2 = scmp.eq.s32.totalorder %s536_s13, 0 }
   0xa   : > { %p55_p3 = scmp.ne.s32.totalorder %s524_s10, %s520_s9  ;;  %p56_p5 = scmp.eq.s32.totalorder %s297_s14, 0 }
   0xb   : > { %s731_s16 = smov (%p31_p0, %s29_s16), 0  ;;  %p599_p4 = por %p505_p1, %p50_p2 }
   0xc   : > { %p603_p6 = por %p56_p5, %p55_p3  ;;  %s65_s19 = ssub.s32 %s532_s12, %s731_s16 }
   0xd   : > { %p66_p7 = scmp.eq.s32.totalorder %s65_s19, 0  ;;  %s68_s20 = sadd.s32 1, %s516_s8 }
   0xe   : > { %s716_s18 = scalar_select %p603_p6, 1, 0 }
   0xf   : > { %s611_s21 = scalar_select %p66_p7, %s516_s8, %s68_s20  }
  0x10   : > { %p78_p8 = scmp.ne.s32.totalorder %s516_s8, %s512_s7  ;;  %p79_p9 = scmp.eq.s32.totalorder %s297_s14, 1 }
  0x11   : > { %p84_p10 = scmp.ne.s32.totalorder %s512_s7, %s508_s6  ;;  %p85_p11 = scmp.eq.s32.totalorder %s298_s15, 1 }
  0x12   : > { %p617_p12 = por %p79_p9, %p78_p8  ;;  %p330_p1 = scmp.lt.s32.totalorder %s536_s13, 2 }
  0x13   : > { %p622_p0 = por %p85_p11, %p84_p10  ;;  %s538_s24 = smov [#allocation2]  }
  0x14   : > { %s717_s22 = scalar_select %p617_p12, 1, 0 }
  0x15   : > { %s718_s23 = scalar_select %p622_p0, 1, 0 }
  0x16   : > { %s119_s25 = sshll.u32 %s538_s24, 4  ;;  %p629_p2 = pnand %p330_p1, %p599_p4  ;;  %s120_s25 = int_to_ptr.vmem [resolvable:$true] %s119_s25 }
  0x17   : > { %s407_s29 = scalar_lea.hbm %s711_s0, 256 }
  0x18   : > { %p408_p3 = scmp.ne.s32.totalorder %s711_s0, %s407_s29  ;;  %p409_p5 = pneg %p629_p2 }
  0x19   : > { %p414_p9 = scmp.lt.s32.totalorder %s407_s29, %s407_s29 }
  0x1a   : > { %p410_p7 = pnand %p409_p5, %p408_p3 }
  0x1c   : > { %p411_p8 = pneg %p410_p7 }
  0x1e   : > { %p416_p10 = pnand %p414_p9, %p411_p8 }
  0x20   : > { %419 = shalt.err (!%p416_p10)
}
  0x21   : > { %s420_s3 = scalar_lea.vmem %s120_s25, 256  ;;  %s427_s4 = scalar_lea.vmem %s120_s25, 512 }
  0x22   : > { %p421_p4 = scmp.ne.s32.totalorder %s120_s25, %s420_s3  ;;  %p428_p13 = scmp.lt.s32.totalorder %s120_s25, %s120_s25 }
  0x23   : > { %p429_p0 = scmp.lt.s32.totalorder %s427_s4, %s420_s3 }
  0x24   : > { %p423_p11 = pnand %p421_p4, %p409_p5 }
  0x25   : > { %p430_p12 = por %p429_p0, %p428_p13 }
  0x26   : > { %p424_p1 = pneg %p423_p11 }
  0x28   : > { %p431_p6 = pnand %p430_p12, %p424_p1 }
  0x2a   : > { %434 = shalt.err (!%p431_p6)
}
  0x2b   : > { %s539_s5 = smov 128   ;;  %s540_s9 = smov 8  }
  0x2c   : > { %325 = dma.hbm_to_vmem [thread:$0]  (!%p629_p2), %s711_s0, 256, %s120_s25, [#allocation3], %s539_s5, %s539_s5, %s540_s9  }
  0x2d   : > { %p304_p3 = scmp.ge.s32.totalorder %s536_s13, 1  ;;  %p127_p7 = scmp.lt.s32.totalorder %s536_s13, 3 }
  0x2f   : > { %p128_p5 = pnand %p304_p3, %p127_p7 }
  0x30   : > { %s133_s17 = sand.u32 (!%p128_p5), 1, %s524_s10   ;;  %p720_p6 = scmp.ne.s32.totalorder (!%p128_p5), %s716_s18, 0 }
  0x31   : > { %131 = sbr.rel (%p128_p5) target bundleno = 118 (0x76), region = 24  ;;  %s305_s19 = sshll.u32 (!%p128_p5), %s133_s17, 4 }
  0x32   : > { %s134_s20 = scalar_lea.sflag (!%p128_p5), [#allocation3], %s133_s17  ;;  %s137_s24 = scalar_lea.vmem (!%p128_p5), [#allocation2], %s305_s19 }
  0x36   : > { %498 = dma.done.wait (%p720_p6), %s134_s20, 256  }
  0x37   : > { %500 = vsyncadd (%p720_p6), %s134_s20, 4294967040  ;;  %s153_s26 = sand.u32 1, %s512_s7   ;;  %s316_s25 = sshll.u32 %s528_s11, 4  ;;  %v541_v0 = vmov 0.0  }
  0x38   : > { %s306_s27 = sshll.u32 %s153_s26, 3  ;;  %s317_s28 = sadd.s32 16, %s316_s25 }
  0x39   : > { %s657_s29 = scalar_lea.vmem [#allocation5], %s306_s27  ;;  %p308_p12 = scmp.gt.s32.totalorder %s317_s28, 16 }
  0x3a   : > { %164 = vst [vmem:[%s657_s29] sm:$0xff] %v541_v0 }
  0x3b   : > { %172 = sbr.rel (%p308_p12) target bundleno = 72 (0x48), region = 36 }
  0x40   : > { %v173_v1 = vld [vmem:[%s137_s24] sm:$0xff]  ;;  %v174_v2 = vld [vmem:[%s137_s24 + $0x8] sm:$0xff] }
  0x41   : > { %v175_v3 = vand.u32 2147483647, %v173_v1  ;;  %v176_v4 = vand.u32 2147483647, %v174_v2  ;;  %v179_v5 = vld [vmem:[%s657_s29] sm:$0xff] }
  0x43   : > { %v177_v6 = vadd.f32 %v176_v4, %v175_v3 }
  0x45   : > { %v180_v7 = vadd.f32 %v179_v5, %v177_v6 }
  0x47   : > { %181 = vst [vmem:[%s657_s29] sm:$0xff] %v180_v7 }
  0x48 PF: > { %p309_p13 = scmp.le.s32.totalorder %s317_s28, 16 }
  0x4a   : > { %184 = sbr.rel (%p309_p13) target bundleno = 94 (0x5e), region = 40 }
  0x4f   : > { %v185_v8 = vld [vmem:[%s137_s24] sm:$0xff]  ;;  %v190_v9 = vlaneseq  ;;  %v193_v10 = vstv %s316_s25  ;;  %v186_v11 = vld [vmem:[%s137_s24 + $0x8] sm:$0xff] }
  0x50   : > { %v187_v13 = vand.u32 2147483647, %v185_v8  ;;  %v188_v16 = vand.u32 2147483647, %v186_v11  ;;  %v202_v20 = vld [vmem:[%s657_s29] sm:$0xff] }
  0x51   : > { %v191_v12 = vshrl.u32 %v190_v9, 7 }
  0x53   : > { %v192_v14 = vadd.s32 8, %v191_v12  ;;  %v194_v15 = vadd.s32 %v193_v10, %v191_v12 }
  0x55   : > { %v195_v17 = vadd.s32 %v193_v10, %v192_v14  ;;  %vm196_vm0 = vcmp.lt.s32.totalorder %v194_v15, 16 }
  0x56   : > { %v198_v18 = vsel %vm196_vm0, %v187_v13, 0.0 }
  0x57   : > { %vm197_vm1 = vcmp.lt.s32.totalorder %v195_v17, 16 }
  0x58   : > { %v199_v19 = vsel %vm197_vm1, %v188_v16, 0.0 }
  0x59   : > { %v200_v21 = vadd.f32 %v199_v19, %v198_v18 }
  0x5b   : > { %v203_v22 = vadd.f32 %v202_v20, %v200_v21 }
  0x5d   : > { %204 = vst [vmem:[%s657_s29] sm:$0xff] %v203_v22 }
  0x5e PF: > { %s312_s18 = sshll.u32 %s528_s11, 7  ;;  %s219_s4 = sshll.u32 %s657_s29, 4  ;;  %s220_s4 = int_to_ptr.vmem [resolvable:$true] %s219_s4 }
  0x5f   : > { %s217_s3 = scalar_lea.hbm %s712_s1, %s312_s18  ;;  %s206_s5 = scalar_lea.sflag [#allocation4], %s153_s26 }
  0x60   : > { %s435_s9 = scalar_lea.vmem %s220_s4, 128  ;;  %p721_p2 = scmp.ne.s32.totalorder %s717_s22, 0 }
  0x61   : > { %p436_p0 = scmp.ne.s32.totalorder %s220_s4, %s435_s9  ;;  %s542_s14 = smov [#allocation5]  }
  0x62   : > { %s439_s15 = sshll.u32 %s542_s14, 4  ;;  %s440_s15 = int_to_ptr.vmem [resolvable:$false] %s439_s15 }
  0x63   : > { %p437_p8 = pnand %p436_p0, %p721_p2  ;;  %s441_s17 = scalar_lea.vmem %s440_s15, 256 }
  0x64   : > { %p442_p10 = scmp.lt.s32.totalorder %s220_s4, %s440_s15  ;;  %p443_p4 = scmp.lt.s32.totalorder %s441_s17, %s435_s9 }
  0x65   : > { %p438_p9 = pneg %p437_p8 }
  0x66   : > { %p444_p11 = por %p443_p4, %p442_p10 }
  0x68   : > { %p445_p1 = pnand %p444_p11, %p438_p9 }
  0x6a   : > { %448 = shalt.err (!%p445_p1)
}
  0x6b   : > { %s449_s11 = scalar_lea.hbm %s217_s3, 128  ;;  %s453_s24 = scalar_lea.hbm %s712_s1, 256 }
  0x6c   : > { %p450_p3 = scmp.ne.s32.totalorder %s217_s3, %s449_s11  ;;  %p454_p6 = scmp.lt.s32.totalorder %s217_s3, %s712_s1 }
  0x6d   : > { %p455_p12 = scmp.lt.s32.totalorder %s453_s24, %s449_s11 }
  0x6e   : > { %p451_p7 = pnand %p450_p3, %p721_p2 }
  0x6f   : > { %p456_p13 = por %p455_p12, %p454_p6 }
  0x70   : > { %p452_p5 = pneg %p451_p7 }
  0x72   : > { %p457_p0 = pnand %p456_p13, %p452_p5 }
  0x74   : > { %460 = shalt.err (!%p457_p0)
}
  0x75   : > { %320 = dma.vmem_to_hbm [thread:$0]  (%p721_p2), %s220_s4, 128, %s217_s3, %s206_s5  }
  0x76 PF: > { %s231_s27 = sand.u32 1, %s508_s6   ;;  %p722_p8 = scmp.ne.s32.totalorder %s718_s23, 0 }
  0x77   : > { %p723_p9 = scmp.ge.s32.totalorder %s536_s13, 2  ;;  %s232_s28 = scalar_lea.sflag [#allocation4], %s231_s27 }
  0x79   : > { %p327_p10 = pnand %p723_p9, %p722_p8 }
  0x7b   : > { %p328_p4 = pneg %p327_p10 }
  0x7d   : > { %502 = dma.done.wait (%p328_p4), %s232_s28, 128  }
  0x7e   : > { %504 = vsyncadd (%p328_p4), %s232_s28, 4294967168  ;;  %s17_s13 = sadd.s32 1, %s536_s13   ;;  %s724_s6 = smov %s512_s7 }
  0x7f   : > { %p14_p11 = scmp.ge.s32.totalorder %s17_s13, 4   ;;  %s725_s7 = smov %s516_s8 }
  0x80   : > { %s726_s8 = smov %s611_s21  ;;  %s727_s9 = smov %s524_s10 }
  0x81   : > { %s701_s10 = smov 0   ;;  %s728_s11 = smov %s532_s12 }
  0x82   : > { %s729_s12 = smov %s731_s16  ;;  %16 = sbr.rel (!%p14_p11) target bundleno = 7 (0x7), region = 81 }
  0x87   :  { %237 = vsyncpa [#allocation3], 1 }
  0x88   :  { %239 = vsyncpa [#allocation3 + $0x1], 1 }
  0x89   :  { %240 = vsyncpa [#allocation4], 1 }
  0x8a   :  { %242 = vsyncpa [#allocation4 + $0x1], 1 }

</bundles_post_ra>
